<compile_context>
chip_gen: v6e
topology: v6e:2x2x1
jax: 0.10.0
libtpu: 0.0.40
codegen_flags: <defaults>
</compile_context>

<pallas_src>
import jax
import jax.numpy as jnp
from jax import lax
from jax.experimental import pallas as pl
from jax.experimental.pallas import tpu as pltpu


# bf16 MXU operands with f32 accumulation; masking / softmax stay in f32.
COMPUTE_DTYPE = jnp.bfloat16


def attention_head_kernel(x_ref, wqkv_ref, o_ref):
    # x_ref: (Bt, S, D) f32   wqkv_ref: (D, 3D) bf16   o_ref: (Bt, S, D) f32
    bt, s, d = x_ref.shape

    x = x_ref[...]
    w_qkv = wqkv_ref[...]                                           # already bf16

    # ---- fused QKV projection: fold batch into M (one (Bt*S, D)x(D, 3D) dot).
    # NOTE: at D < 128 the reshape / lane-offset slices below may lower to
    # relayout copies; irrelevant at model sizes (D >= 128) and at the toy
    # shape the kernel is grid/DMA-overhead bound anyway.
    x2d = x.reshape(bt * s, d).astype(COMPUTE_DTYPE)
    qkv = jnp.dot(x2d, w_qkv, preferred_element_type=jnp.float32)   # (Bt*S, 3D)
    qkv = qkv.reshape(bt, s, 3 * d)

    q = qkv[:, :, 0 * d:1 * d].astype(COMPUTE_DTYPE)
    k = qkv[:, :, 1 * d:2 * d].astype(COMPUTE_DTYPE)
    v = qkv[:, :, 2 * d:3 * d].astype(COMPUTE_DTYPE)

    # ---- scaled scores: contract the shared last dim (no k transpose),
    # batched over Bt.
    scores = lax.dot_general(
        q, k,
        dimension_numbers=(((2,), (2,)), ((0,), (0,))),
        preferred_element_type=jnp.float32,
    ) * (1.0 / jnp.sqrt(jnp.float32(d)))                            # (Bt, S, S)

    # ---- causal mask: one small (S, S) iota pair per step, broadcast over Bt.
    row = lax.broadcasted_iota(jnp.int32, (s, s), 0)
    col = lax.broadcasted_iota(jnp.int32, (s, s), 1)
    masked = jnp.where((col > row)[None, :, :], -jnp.inf, scores)

    # ---- numerically stable f32 softmax; approx reciprocal rides the EUP
    # slot (rows sum to 1 +/- ~1e-3 rel; switch to approx=False if tighter
    # parity with the torch reference is ever required).
    m = jnp.max(masked, axis=-1, keepdims=True)
    e = jnp.exp(masked - m)
    denom = jnp.sum(e, axis=-1, keepdims=True)
    probs = e * pl.reciprocal(denom, approx=True)                   # (Bt, S, S)

    # ---- weighted sum of values (batched over Bt).
    out = lax.dot_general(
        probs.astype(COMPUTE_DTYPE), v,
        dimension_numbers=(((2,), (1,)), ((0,), (0,))),
        preferred_element_type=jnp.float32,
    )                                                               # (Bt, S, D)

    o_ref[...] = out.astype(o_ref.dtype)


def _vmem_capacity_bytes():
    """Per-generation VMEM capacity (falls back to the v7x 64 MiB floor)."""
    try:
        return int(pltpu.get_tpu_info().vmem_capacity_bytes)
    except Exception:
        return 64 << 20


def _per_step_vmem_estimate(bt, S, D):
    """Rough live-bytes estimate for one grid step (pipeline buffers + temps)."""
    blk = bt * S * D * 4
    pipeline = 2 * blk * 2                     # double-buffered x-in and out
    weight = 2 * D * (3 * D) * 2               # resident bf16 fused weight (x2)
    # temporaries: x bf16 copy, qkv f32, q/k/v bf16, out f32, 3x (bt,S,S) f32.
    temps = bt * S * (D * (2 + 12 + 6 + 4) + S * 12)
    return pipeline + weight + temps


def _pick_bt(B, S, D, m_target, vmem_budget):
    """Largest divisor of B that fits the MXU M target and VMEM budget while
    keeping >= 2 (preferably 4) grid steps for pipelining / v7x megacore."""
    divisors = [bt for bt in range(1, B + 1) if B % bt == 0]
    cands = [bt for bt in divisors
             if bt * S <= max(S, m_target)
             and _per_step_vmem_estimate(bt, S, D) <= vmem_budget]
    if not cands:
        cands = [1]
    for min_steps in (4, 2, 1):
        ok = [bt for bt in cands if B // bt >= min_steps]
        if ok:
            return max(ok)
    return 1


def attention_head(x, w_q, w_k, w_v, *, m_target=256):
    """x: [B, S, D] float32; weights: [D, D] float32 -> [B, S, D] float32.

    m_target: MXU M-dimension target per grid step (use 128 on v5e's 128x128
    MXU, 256 on v6e/v7x).
    """
    B, S, D = x.shape

    # Fuse the three projection weights into one (D, 3D) bf16 operand, once,
    # outside the kernel. (Ideally the caller stores this fused bf16 array as
    # the parameter so this is not redone every forward call.)
    w_qkv = jnp.concatenate([w_q, w_k, w_v], axis=1).astype(COMPUTE_DTYPE)

    vmem_cap = _vmem_capacity_bytes()
    vmem_budget = vmem_cap // 4               # headroom for compiler scratch
    bt = _pick_bt(B, S, D, m_target, vmem_budget)

    return pl.pallas_call(
        attention_head_kernel,
        out_shape=jax.ShapeDtypeStruct((B, S, D), x.dtype),
        grid_spec=pltpu.PrefetchScalarGridSpec(
            num_scalar_prefetch=0,
            grid=(B // bt,),
            in_specs=[
                pl.BlockSpec((bt, S, D), lambda b: (b, 0, 0)),     # x batch slab
                pl.BlockSpec((D, 3 * D), lambda b: (0, 0)),        # fused bf16 W_QKV
            ],
            out_specs=pl.BlockSpec((bt, S, D), lambda b: (b, 0, 0)),
        ),
        compiler_params=pltpu.CompilerParams(
            dimension_semantics=("parallel",),
            vmem_limit_bytes=vmem_cap // 2,
        ),
    )(x, w_qkv)


def xavier_uniform(key, fan_in, fan_out, dtype=jnp.float32):
    # nn.init.xavier_uniform_ with gain=1: U(-a, a), a = sqrt(6 / (fan_in + fan_out))
    a = (6.0 / (fan_in + fan_out)) ** 0.5
    return jax.random.uniform(key, (fan_in, fan_out), dtype=dtype, minval=-a, maxval=a)


def reference_attention_head(x, w_q, w_k, w_v):
    B, S, D = x.shape
    q = x @ w_q
    k = x @ w_k
    v = x @ w_v
    scores = jnp.einsum("bqd,bkd->bqk", q, k) / jnp.sqrt(jnp.float32(D))
    mask = jnp.triu(jnp.full((S, S), -jnp.inf, dtype=jnp.float32), k=1)
    masked = scores + mask[None, :, :]
    probs = jax.nn.softmax(masked, axis=-1)
    return probs @ v


if __name__ == "__main__":
    B, S, D = 2, 8, 32  # batch, sequence_length, embedding_dim

    key = jax.random.PRNGKey(0)
    kx, kq, kk, kv = jax.random.split(key, 4)

    x = jax.random.normal(kx, (B, S, D), dtype=jnp.float32)
    w_q = xavier_uniform(kq, D, D)
    w_k = xavier_uniform(kk, D, D)
    w_v = xavier_uniform(kv, D, D)

    out = attention_head(x, w_q, w_k, w_v)
    out = jax.block_until_ready(out)

    ref = reference_attention_head(x, w_q, w_k, w_v)
    assert out.shape == (B, S, D)
    # bf16 MXU operands (f32 accumulation) + approx reciprocal -> compare
    # against the f32 reference at a correspondingly looser tolerance.
    assert jnp.allclose(out, ref, atol=3e-2, rtol=3e-2), "mismatch vs reference"

    print("KERNEL_OK")
</pallas_src>

<mosaic_0001>
module attributes {stable_mosaic.version = 11 : i64} {
  func.func @attention_head_kernel(%arg0: i32, %arg1: memref<1x8x32xf32, #tpu.memory_space<vmem>>, %arg2: memref<32x96xbf16, #tpu.memory_space<vmem>>, %arg3: memref<1x8x32xf32, #tpu.memory_space<vmem>>) attributes {dimension_semantics = [#tpu.dimension_semantics<parallel>], iteration_bounds = array<i64: 2>, scalar_prefetch = 0 : i64, scratch_operands = 0 : i64, tpu.core_type = #tpu.core_type<tc>, window_params = [{transform_indices = @transform_0, window_bounds = array<i64: 1, 8, 32>}, {pipeline_mode = #tpu.pipeline_mode<synchronous>, transform_indices = @transform_1, window_bounds = array<i64: 32, 96>}, {transform_indices = @transform_2, window_bounds = array<i64: 1, 8, 32>}]} {
    %c0 = arith.constant 0 : index
    %c0_0 = arith.constant 0 : index
    %c0_1 = arith.constant 0 : index
    %0 = vector.load %arg1[%c0, %c0_0, %c0_1] : memref<1x8x32xf32, #tpu.memory_space<vmem>>, vector<1x8x32xf32>
    %c0_2 = arith.constant 0 : index
    %c0_3 = arith.constant 0 : index
    %1 = vector.load %arg2[%c0_2, %c0_3] : memref<32x96xbf16, #tpu.memory_space<vmem>>, vector<32x96xbf16>
    %2 = vector.shape_cast %0 : vector<1x8x32xf32> to vector<8x32xf32>
    %3 = arith.truncf %2 : vector<8x32xf32> to vector<8x32xbf16>
    %cst = arith.constant dense<0.000000e+00> : vector<8x96xf32>
    %4 = tpu.matmul %3, %1, %cst {dimension_numbers = #tpu.dot_dimension_numbers<[1], [0], [0], [1], [0, 0, 1, 1], [], []>} : vector<8x32xbf16>, vector<32x96xbf16>, vector<8x96xf32> -> vector<8x96xf32>
    %5 = vector.shape_cast %4 : vector<8x96xf32> to vector<1x8x96xf32>
    %6 = vector.extract_strided_slice %5 {offsets = [0, 0, 0], sizes = [1, 8, 32], strides = [1, 1, 1]} : vector<1x8x96xf32> to vector<1x8x32xf32>
    %7 = arith.truncf %6 : vector<1x8x32xf32> to vector<1x8x32xbf16>
    %8 = vector.extract_strided_slice %5 {offsets = [0, 0, 32], sizes = [1, 8, 32], strides = [1, 1, 1]} : vector<1x8x96xf32> to vector<1x8x32xf32>
    %9 = arith.truncf %8 : vector<1x8x32xf32> to vector<1x8x32xbf16>
    %10 = vector.extract_strided_slice %5 {offsets = [0, 0, 64], sizes = [1, 8, 32], strides = [1, 1, 1]} : vector<1x8x96xf32> to vector<1x8x32xf32>
    %11 = arith.truncf %10 : vector<1x8x32xf32> to vector<1x8x32xbf16>
    %cst_4 = arith.constant dense<0.000000e+00> : vector<1x8x8xf32>
    %12 = tpu.matmul %7, %9, %cst_4 {dimension_numbers = #tpu.dot_dimension_numbers<[2], [2], [1], [1], [0, 0, 0, 1, 1, 1], [0], [0]>} : vector<1x8x32xbf16>, vector<1x8x32xbf16>, vector<1x8x8xf32> -> vector<1x8x8xf32>
    %cst_5 = arith.constant 3.200000e+01 : f32
    %13 = math.sqrt %cst_5 : f32
    %cst_6 = arith.constant 1.000000e+00 : f32
    %14 = arith.divf %cst_6, %13 : f32
    %15 = vector.broadcast %14 : f32 to vector<1x8x8xf32>
    %16 = arith.mulf %12, %15 : vector<1x8x8xf32>
    %17 = tpu.iota {dimensions = array<i32: 0>} : vector<8x8xi32>
    %18 = tpu.iota {dimensions = array<i32: 1>} : vector<8x8xi32>
    %19 = arith.cmpi sgt, %18, %17 : vector<8x8xi32>
    %20 = vector.shape_cast %19 : vector<8x8xi1> to vector<1x8x8xi1>
    %cst_7 = arith.constant 0xFF800000 : f32
    %21 = vector.broadcast %cst_7 : f32 to vector<1x8x8xf32>
    %22 = arith.select %20, %21, %16 : vector<1x8x8xi1>, vector<1x8x8xf32>
    %cst_8 = arith.constant dense<0xFF800000> : vector<1x8xf32>
    %23 = vector.multi_reduction <maximumf>, %22, %cst_8 [2] : vector<1x8x8xf32> to vector<1x8xf32>
    %24 = vector.shape_cast %23 : vector<1x8xf32> to vector<1x8x1xf32>
    %25 = vector.broadcast %24 : vector<1x8x1xf32> to vector<1x8x8xf32>
    %26 = arith.subf %22, %25 : vector<1x8x8xf32>
    %27 = math.exp %26 : vector<1x8x8xf32>
    %cst_9 = arith.constant dense<0.000000e+00> : vector<1x8xf32>
    %28 = vector.multi_reduction <add>, %27, %cst_9 [2] : vector<1x8x8xf32> to vector<1x8xf32>
    %29 = vector.shape_cast %28 : vector<1x8xf32> to vector<1x8x1xf32>
    %30 = tpu.reciprocal %29 {approx = true} : vector<1x8x1xf32> -> vector<1x8x1xf32>
    %31 = vector.broadcast %30 : vector<1x8x1xf32> to vector<1x8x8xf32>
    %32 = arith.mulf %27, %31 : vector<1x8x8xf32>
    %33 = arith.truncf %32 : vector<1x8x8xf32> to vector<1x8x8xbf16>
    %cst_10 = arith.constant dense<0.000000e+00> : vector<1x8x32xf32>
    %34 = tpu.matmul %33, %11, %cst_10 {dimension_numbers = #tpu.dot_dimension_numbers<[2], [1], [1], [2], [0, 0, 0, 1, 1, 2], [0], [0]>} : vector<1x8x8xbf16>, vector<1x8x32xbf16>, vector<1x8x32xf32> -> vector<1x8x32xf32>
    %c0_11 = arith.constant 0 : index
    %c0_12 = arith.constant 0 : index
    %c0_13 = arith.constant 0 : index
    %35 = vector.load %arg3[%c0_11, %c0_12, %c0_13] : memref<1x8x32xf32, #tpu.memory_space<vmem>>, vector<1x8x32xf32>
    tpu.vector_store %arg3[%c0_11, %c0_12, %c0_13], %34 {strides = array<i32>} : memref<1x8x32xf32, #tpu.memory_space<vmem>>, vector<1x8x32xf32>,
    return
  }
  func.func @transform_0(%arg0: i32) -> (i32, i32, i32) {
    %c0_i32 = arith.constant 0 : i32
    %c0_i32_0 = arith.constant 0 : i32
    %c0_i32_1 = arith.constant 0 : i32
    return %arg0, %c0_i32, %c0_i32_0 : i32, i32, i32
  }
  func.func @transform_1(%arg0: i32) -> (i32, i32) {
    %c0_i32 = arith.constant 0 : i32
    %c0_i32_0 = arith.constant 0 : i32
    %c0_i32_1 = arith.constant 0 : i32
    return %c0_i32, %c0_i32_0 : i32, i32
  }
  func.func @transform_2(%arg0: i32) -> (i32, i32, i32) {
    %c0_i32 = arith.constant 0 : i32
    %c0_i32_0 = arith.constant 0 : i32
    %c0_i32_1 = arith.constant 0 : i32
    return %arg0, %c0_i32, %c0_i32_0 : i32, i32, i32
  }
}

</mosaic_0001>

<bundles_post_ra>
// kernel: tpu_custom_call.1
= control target key start
LH: loop header
LB: loop body
LE: loop exit
PB: predicated region body
PF: predicated region fallthrough
CT: control target
= control target key end

     0   :  { %7 = vsyncpa [#allocation3], 0  ;;  %s891_s0 = inlined_call_operand.hbm [shape: f32[2,8,32], index: 0, kind: input, shape index: {}]   ;;  %s892_s1 = inlined_call_operand.hbm [shape: bf16[32,96], index: 1, kind: input, shape index: {}]   ;;  %s893_s2 = inlined_call_operand.hbm [shape: f32[2,8,32], index: 2, kind: output, shape index: {}]  }
   0x1   :  { %9 = vsyncpa [#allocation3 + $0x1], 0 }
   0x2   :  { %10 = vsyncpa [#allocation6], 0 }
   0x3   :  { %11 = vsyncpa [#allocation4], 0 }
   0x4   :  { %13 = vsyncpa [#allocation4 + $0x1], 0  ;;  %s714_s9 = smov 0   ;;  %s716_s10 = smov 0  }
   0x5   :  { %s718_s11 = smov 0   ;;  %s720_s12 = smov 0  }
   0x6 LB: > { %s735_s13 = sadd.s32 4294967295, %s688_s12   ;;  %s451_s14 = sadd.s32 4294967294, %s688_s12   ;;  %s688_s12 = sphi %s720_s12, %s915_s12   ;;  %s684_s11 = sphi %s718_s11, %s914_s11   ;;  %s680_s10 = sphi %s716_s10, %s913_s10   ;;  %s676_s9 = sphi %s714_s9, %s912_s9  }
   0x7   : > { %p39_p0 = scmp.ne.s32.totalorder %s680_s10, %s676_s9  ;;  %p894_p1 = scmp.eq.s32.totalorder %s735_s13, 0 }
   0x8   : > { %p90_p3 = scmp.eq.s32.totalorder %s451_s14, 1  ;;  %p452_p5 = scmp.ge.s32.totalorder %s688_s12, 1 }
   0x9   : > { %p744_p4 = por %p894_p1, %p39_p0  ;;  %p97_p7 = scmp.lt.s32.totalorder %s688_s12, 3 }
   0xa   : > { %p749_p6 = por %p90_p3, %p39_p0  ;;  %s690_s18 = smov [#allocation5]  }
   0xb   : > { %s898_s15 = scalar_select %p744_p4, 1, 0 }
   0xc   : > { %s899_s16 = scalar_select %p749_p6, 1, 0 }
   0xd   : > { %p754_p8 = pnand %p452_p5, %p97_p7  ;;  %s109_s19 = sshll.u32 %s690_s18, 4  ;;  %s110_s19 = int_to_ptr.vmem [resolvable:$true] %s109_s19 }
   0xe   : > { %s768_s21 = sadd.s32 1, %s688_s12   ;;  %s26_s22 = sadd.s32 1, %s684_s11 }
   0xf   : > { %s900_s17 = scalar_select %p754_p8, 1, 0 }
  0x10   : > { %p505_p9 = pneg %p754_p8  ;;  %s23_s23 = ssub.s32 %s688_s12, %s768_s21 }
  0x11   : > { %s577_s24 = scalar_lea.vmem %s110_s19, 256  ;;  %p585_p5 = scmp.lt.s32.totalorder %s110_s19, %s110_s19 }
  0x12   : > { %p763_p11 = pnand %p505_p9, %p894_p1  ;;  %p578_p13 = scmp.ne.s32.totalorder %s110_s19, %s577_s24 }
  0x13   : > { %p586_p7 = scmp.lt.s32.totalorder %s577_s24, %s577_s24 }
  0x14   : > { %p568_p12 = pneg %p763_p11 }
  0x15   : > { %p587_p10 = por %p586_p7, %p585_p5 }
  0x16   : > { %p580_p0 = pnand %p578_p13, %p568_p12 }
  0x18   : > { %p581_p3 = pneg %p580_p0 }
  0x1a   : > { %p588_p2 = pnand %p587_p10, %p581_p3 }
  0x1c   : > { %591 = shalt.err (!%p588_p2)
}
  0x1d   : > { %s691_s25 = smov 64   ;;  %s692_s26 = smov 4  }
  0x1e   : > { %508 = dma.hbm_to_vmem [thread:$0]  (!%p763_p11), %s892_s1, 256, %s110_s19, [#allocation6], %s691_s25, %s691_s25, %s692_s26  }
  0x1f   : > { %p24_p9 = scmp.eq.s32.totalorder %s23_s23, 0  ;;  %p33_p12 = scmp.ne.s32.totalorder %s684_s11, %s680_s10 }
  0x20   : > { %p34_p10 = scmp.eq.s32.totalorder %s688_s12, 0  ;;  %p518_p2 = scmp.lt.s32.totalorder %s688_s12, 2 }
  0x21   : > { %s785_s29 = scalar_select %p24_p9, %s684_s11, %s26_s22  }
  0x22   : > { %p35_p13 = por %p34_p10, %p33_p12  ;;  %p902_p0 = scmp.eq.s32.totalorder %s735_s13, 1 }
  0x23   : > { %s123_s3 = sand.u32 1, %s684_s11   ;;  %s456_s4 = sshll.u32 %s688_s12, 7 }
  0x24   : > { %p789_p3 = por %p902_p0, %p33_p12  ;;  %s455_s5 = sshll.u32 %s123_s3, 3 }
  0x25   : > { %s798_s8 = scalar_lea.hbm %s891_s0, %s456_s4  ;;  %s127_s14 = scalar_lea.vmem [#allocation2], %s455_s5 }
  0x26   : > { %s903_s30 = scalar_select %p789_p3, 1, 0 }
  0x27   : > { %s134_s18 = sshll.u32 %s127_s14, 4  ;;  %p800_p11 = pnand %p518_p2, %p35_p13  ;;  %s135_s18 = int_to_ptr.vmem [resolvable:$true] %s134_s18 }
  0x28   : > { %s124_s20 = scalar_lea.sflag [#allocation3], %s123_s3  ;;  %s592_s22 = scalar_lea.hbm %s798_s8, 128 }
  0x29   : > { %p593_p5 = scmp.ne.s32.totalorder %s798_s8, %s592_s22  ;;  %p594_p7 = pneg %p800_p11 }
  0x2a   : > { %s597_s25 = scalar_lea.hbm %s891_s0, 256  ;;  %p598_p10 = scmp.lt.s32.totalorder %s798_s8, %s891_s0 }
  0x2b   : > { %p595_p9 = pnand %p594_p7, %p593_p5  ;;  %p599_p2 = scmp.lt.s32.totalorder %s597_s25, %s592_s22 }
  0x2d   : > { %p596_p12 = pneg %p595_p9  ;;  %p600_p13 = por %p599_p2, %p598_p10 }
  0x2f   : > { %p601_p0 = pnand %p600_p13, %p596_p12 }
  0x31   : > { %604 = shalt.err (!%p601_p0)
}
  0x32   : > { %s605_s28 = scalar_lea.vmem %s135_s18, 128  ;;  %s693_s3 = smov [#allocation2]  }
  0x33   : > { %p606_p1 = scmp.ne.s32.totalorder %s135_s18, %s605_s28  ;;  %s610_s4 = sshll.u32 %s693_s3, 4  ;;  %s611_s4 = int_to_ptr.vmem [resolvable:$false] %s610_s4 }
  0x34   : > { %s612_s5 = scalar_lea.vmem %s611_s4, 256  ;;  %p613_p5 = scmp.lt.s32.totalorder %s135_s18, %s611_s4 }
  0x35   : > { %p608_p6 = pnand %p606_p1, %p594_p7  ;;  %p614_p9 = scmp.lt.s32.totalorder %s612_s5, %s605_s28 }
  0x37   : > { %p609_p3 = pneg %p608_p6  ;;  %p615_p4 = por %p614_p9, %p613_p5 }
  0x39   : > { %p616_p8 = pnand %p615_p4, %p609_p3 }
  0x3b   : > { %619 = shalt.err (!%p616_p8)
}
  0x3c   : > { %512 = dma.hbm_to_vmem [thread:$0]  (!%p800_p11), %s798_s8, 128, %s135_s18, %s124_s20  }
  0x3d   : > { %p905_p12 = scmp.ne.s32.totalorder %s900_s17, 0 }
  0x3e   : > { %s821_s6 = sand.u32 (!%p905_p12), 1, %s680_s10   ;;  %p906_p1 = scmp.ne.s32.totalorder (!%p905_p12), %s898_s15, 0 }
  0x3f   : > { %143 = sbr.rel (%p905_p12) target bundleno = 1119 (0x45f), region = 28  ;;  %s458_s7 = sshll.u32 (!%p905_p12), %s821_s6, 3 }
  0x40   : > { %s146_s14 = scalar_lea.sflag (!%p905_p12), [#allocation3], %s821_s6  ;;  %s149_s22 = scalar_lea.vmem (!%p905_p12), [#allocation2], %s458_s7 }
  0x44   : > { %663 = dma.done.wait (%p906_p1), %s146_s14, 128  }
  0x45   : > { %665 = vsyncadd (%p906_p1), %s146_s14, 4294967168  ;;  %p907_p4 = scmp.eq.s32.totalorder %s735_s13, 0 }
  0x47   : > { %667 = dma.done.wait (%p907_p4), [#allocation6], 256   ;;  %p908_p6 = pmov %p907_p4 }
  0x48   : > { %v694_v0 = vmov 0.0   ;;  %vm695_vm0 = vmmov 0   ;;  %v560_v1 = vld [vmem:[#allocation5 + $0x8] sm:$0xff]   ;;  %v561_v2 = vld [vmem:[#allocation5] sm:$0xff]   ;;  %v175_v3 = vld [vmem:[%s149_s22] sm:$0xff]  ;;  %vm193_vm1 = vcmask 261120   ;;  %v288_v12 = vlaneseq }
  0x49   : > { %669 = vsyncadd (%p908_p6), [#allocation6], 4294967040  ;;  %477 = vmatprep.subr.bf16.mxu0 %v694_v0  ;;  %481 = vmatprep.mubr.msk.bf16.mxu0 %vm695_vm0, %v694_v0  ;;  %v180_v4 = vpack.c.bf16 %v175_v3, %v175_v3  ;;  %s696_s15 = smov 96   ;;  %vm294_vm3 = vcmask 64512   ;;  %s697_s17 = smov 64   ;;  %vm312_vm4 = vcmask 1043456  }
  0x4a   : > { %485 = vmatprep.subr.bf16.mxu1 %v694_v0  ;;  %487 = vmatprep.mubr.msk.bf16.mxu1 %vm695_vm0, %v694_v0  ;;  %v289_v13 = vshrl.u32 %v288_v12, 7  ;;  %v291_v14 = vand.u32 127, %v288_v12  ;;  %s467_s8 = sshll.u32 %s735_s13, 7  ;;  %s173_s18 = scalar_lea.vmem [#allocation7], %s458_s7 }
  0x4b   : > { %478 = vmatpush3.bf16.msra.mxu0 %v560_v1  ;;  %s371_s19 = sshll.u32 %s173_s18, 4  ;;  %s847_s24 = scalar_lea.hbm %s893_s2, %s467_s8  ;;  %s849_s19 = int_to_ptr.vmem [resolvable:$true] %s371_s19 }
  0x4c   : > { %479 = vmatprep.subr.bf16.mxu0 %v694_v0  ;;  %vm292_vm2 = vcmp.gt.s32.totalorder %v291_v14, %v289_v13  ;;  %s358_s25 = scalar_lea.sflag [#allocation4], %s821_s6  ;;  %s620_s26 = scalar_lea.vmem %s849_s19, 128 }
  0x4d   : > { %p621_p8 = scmp.ne.s32.totalorder %s849_s19, %s620_s26  ;;  %p909_p3 = scmp.ne.s32.totalorder %s903_s30, 0 }
  0x4e   : > { %s698_s13 = smov [#allocation7]  }
  0x4f   : > { %480 = vmatpush3.bf16.msra.mxu0 %v561_v2  ;;  %p622_p11 = pnand %p621_p8, %p909_p3  ;;  %s624_s27 = sshll.u32 %s698_s13, 4  ;;  %s625_s27 = int_to_ptr.vmem [resolvable:$false] %s624_s27 }
  0x50   : > { %491 = vmatprep.subr.bf16.mxu0 %v694_v0  ;;  %s626_s28 = scalar_lea.vmem %s625_s27, 256  ;;  %p627_p10 = scmp.lt.s32.totalorder %s849_s19, %s625_s27 }
  0x51   : > { %p623_p7 = pneg %p622_p11  ;;  %p628_p2 = scmp.lt.s32.totalorder %s626_s28, %s620_s26 }
  0x52   : > { %482 = vmatmul.mubr.msk.bf16.vlgmr.msra.gmra.mxu0 %vm193_vm1, %v180_v4 }
  0x53   : > { %493 = vmatprep.mubr.msk.bf16.mxu0 %vm695_vm0, %v694_v0  ;;  %p629_p13 = por %p628_p2, %p627_p10 }
  0x55   : > { %p630_p0 = pnand %p629_p13, %p623_p7 }
 0x112   : > { %v231_v5 = vpop.f32.mrf.mxu0 }
 0x113   : > { %v237_v6 = vpack.c.bf16 %v231_v5, %v231_v5 }
 0x114   : > { %v483_v7 = vpop.f32.mrf.mxu0 }
 0x115   : > { %239 = vrot.lane.b32.xlu0 %v237_v6, %s696_s15 }
 0x116   : > { %v234_v8 = vpop.f32.mrf.mxu0 }
 0x118   : > { %v484_v9 = vpop.f32.mrf.mxu0 }
 0x187   : > { %v240_v10 = vpop.permute.xlu0 %239 }
 0x188   : > { %v245_v11 = vsel %vm193_vm1, %v240_v10, 0 }
 0x189   : > { %486 = vmatpush3.bf16.xpose.msra.mxu1 %v245_v11 }
 0x190   : > { %488 = vmatmul.mubr.msk.bf16.vlgmr.msra.gmra.mxu1 %vm193_vm1, %v237_v6 }
 0x250   : > { %v281_v15 = vpop.f32.mrf.mxu1 }
 0x251   : > { %v287_v16 = vmul.f32 0.17677669, %v281_v15 }
 0x252   : > { %v489_v17 = vpop.f32.mrf.mxu1 }
 0x253   : > { %v293_v18 = vsel %vm292_vm2, -inf, %v287_v16 }
 0x254   : > { %v284_v19 = vpop.f32.mrf.mxu1  ;;  %v295_v20 = vsel %vm294_vm3, %v293_v18, -inf }
 0x255   : > { %296 = vmax.xlane.f32.xlu0 %v295_v20 }
 0x256   : > { %v490_v21 = vpop.f32.mrf.mxu1 }
 0x2de   : > { %v297_v22 = vpop.xlane.xlu0 %296 }
 0x2df   : > { %v298_v23 = vsub.f32 %v293_v18, %v297_v22 }
 0x2e1   : > { %v299_v24 = vmul.f32 1.442695, %v298_v23 }
 0x2e3   : > { %562 = vpow2.f32 %v299_v24 }
 0x2f0   : > { %v563_v25 = vpop.eup %562 }
 0x2f1   : > { %v301_v26 = vsel %vm294_vm3, %v563_v25, 0.0 }
 0x2f2   : > { %302 = vadd.xlane.f32.xlu1 %v301_v26 }
 0x303   : > { %307 = vrot.lane.b32.xlu1 %v237_v6, %s697_s17 }
 0x37b   : > { %v303_v27 = vpop.xlane.xlu1 %302 }
 0x37c   : > { %564 = vrcp.f32 %v303_v27 }
 0x37f   : > { %v308_v28 = vpop.permute.xlu1 %307 }
 0x380   : > { %v314_v29 = vsel %vm312_vm4, %v308_v28, 0 }
 0x381   : > { %492 = vmatpush3.bf16.msra.mxu0 %v314_v29 }
 0x389   : > { %v565_v30 = vpop.eup %564 }
 0x38a   : > { %v305_v31 = vmul.f32 %v565_v30, %v563_v25 }
 0x38c   : > { %v306_v32 = vpack.c.bf16 %v305_v31, %v305_v31 }
 0x38e   : > { %494 = vmatmul.mubr.msk.bf16.vlgmr.msra.gmra.mxu0 %vm294_vm3, %v306_v32 }
 0x44e   : > { %v350_v33 = vpop.f32.mrf.mxu0 }
 0x44f   : > { %356 = vst.msk [vmem:[%s173_s18] sm:$0xff] %vm193_vm1, %v350_v33 }
 0x450   : > { %v495_v34 = vpop.f32.mrf.mxu0 }
 0x451   : > { %633 = shalt.err (!%p630_p0)
}
 0x452   : > { %s634_s3 = scalar_lea.hbm %s847_s24, 128  ;;  %s638_s6 = scalar_lea.hbm %s893_s2, 256 }
 0x453   : > { %p635_p5 = scmp.ne.s32.totalorder %s847_s24, %s634_s3  ;;  %p639_p1 = scmp.lt.s32.totalorder %s847_s24, %s893_s2 }
 0x454   : > { %p640_p4 = scmp.lt.s32.totalorder %s638_s6, %s634_s3 }
 0x455   : > { %p636_p9 = pnand %p635_p5, %p909_p3 }
 0x456   : > { %p641_p6 = por %p640_p4, %p639_p1 }
 0x457   : > { %p637_p12 = pneg %p636_p9 }
 0x459   : > { %p642_p8 = pnand %p641_p6, %p637_p12 }
 0x45b   : > { %645 = shalt.err (!%p642_p8)
}
 0x45c   : > { %503 = dma.vmem_to_hbm [thread:$0]  (%p909_p3), %s849_s19, 128, %s847_s24, %s358_s25   ;;  %v353_v35 = vpop.f32.mrf.mxu0 }
 0x45e   : > { %v496_v36 = vpop.f32.mrf.mxu0 }
 0x45f PF: > { %s383_s22 = sand.u32 1, %s676_s9   ;;  %p910_p11 = scmp.ne.s32.totalorder %s899_s16, 0 }
 0x460   : > { %p911_p7 = scmp.ge.s32.totalorder %s688_s12, 2  ;;  %s384_s15 = scalar_lea.sflag [#allocation4], %s383_s22 }
 0x462   : > { %p514_p10 = pnand %p911_p7, %p910_p11 }
 0x464   : > { %p515_p2 = pneg %p514_p10 }
 0x466   : > { %671 = dma.done.wait (%p515_p2), %s384_s15, 128  }
 0x467   : > { %673 = vsyncadd (%p515_p2), %s384_s15, 4294967168  ;;  %p16_p3 = scmp.ge.s32.totalorder %s768_s21, 4   ;;  %s912_s9 = smov %s680_s10 }
 0x468   : > { %s913_s10 = smov %s684_s11  ;;  %s914_s11 = smov %s785_s29 }
 0x469   : > { %s915_s12 = smov %s768_s21  ;;  %18 = sbr.rel (!%p16_p3) target bundleno = 6 (0x6), region = 77 }
 0x46e   :  { %389 = vsyncpa [#allocation3], 1 }
 0x46f   :  { %391 = vsyncpa [#allocation3 + $0x1], 1 }
 0x470   :  { %392 = vsyncpa [#allocation6], 1 }
 0x471   :  { %393 = vsyncpa [#allocation4], 1 }
 0x472   :  { %395 = vsyncpa [#allocation4 + $0x1], 1 }

</bundles_post_ra>
